<compile_context>
chip_gen: v7x
topology: tpu7x:2x2x1
jax: 0.10.0
libtpu: 0.0.40
codegen_flags: <defaults>
</compile_context>

<pallas_src>
import functools

import jax
import jax.numpy as jnp
from jax.experimental import pallas as pl
from jax.experimental.pallas import tpu as pltpu


def _composed_kernel(w_ref, tok_ref, seq_ref, o_ref, *, op, k):
    # Weighted sum of the K prompt rows -> (1, D), computed in f32.
    tok = tok_ref[...].astype(jnp.float32)          # (K, D) tiny, VMEM-resident
    comb = w_ref[0] * tok[0:1, :]                   # scalar (SMEM) * (1, D) vreg row
    for i in range(1, k):                           # K is static and small -> unrolled
        comb = comb + w_ref[i] * tok[i:i + 1, :]
    seq = seq_ref[...].astype(jnp.float32)          # (tm, D) streamed tile
    res = comb * seq if op == "mul" else comb + seq
    o_ref[...] = res.astype(o_ref.dtype)


def _pick_row_tile(n_rows, d, itemsize, target_block_bytes=512 * 1024):
    """Largest lane-dense row tile: ~512 KiB per streamed block, capped at 1024 rows."""
    pack = 8 * max(1, 4 // itemsize)  # sublane packing: 8 (f32), 16 (bf16), 32 (int8)
    tm = max(pack, (target_block_bytes // max(1, d * itemsize)) // pack * pack)
    tm = min(tm, 1024)                # diminishing returns beyond ~1024 rows at D=128
    n_padded = -(-n_rows // pack) * pack
    return min(tm, n_padded)          # never allocate a block larger than (padded) N


def composedtoken_forward(weight, texttoken, seq, *, type_="mul", tm=None):
    """weight: (1, K) f32; texttoken: (K, D); seq: (N, D). Returns (N, D) in seq.dtype."""
    assert type_ in ("mul", "add")
    K, D = texttoken.shape
    N, D2 = seq.shape
    assert D == D2 and weight.shape == (1, K)

    itemsize = jnp.dtype(seq.dtype).itemsize
    if tm is None:
        tm = _pick_row_tile(N, D, itemsize)

    w_flat = weight.reshape(K).astype(jnp.float32)

    # VMEM budget: 2 streams (seq, out) x 2 pipeline buffers x block + resident prompt
    # table (x2 for safety) + headroom.  Clamped to <=48 MiB (v7x has 64 MiB physical).
    block_bytes = tm * D * itemsize
    tok_bytes = K * D * jnp.dtype(texttoken.dtype).itemsize
    vmem_limit = int(min(max(8 * block_bytes + 4 * tok_bytes + (2 << 20), 16 << 20),
                         48 << 20))

    grid = (pl.cdiv(N, tm),)  # partial last block is masked; no N % tm requirement
    tok_spec = pl.BlockSpec((K, D), lambda i: (0, 0))   # resident full prompt table
    seq_spec = pl.BlockSpec((tm, D), lambda i: (i, 0))  # streamed, lane-dense rows

    kernel = functools.partial(_composed_kernel, op=type_, k=K)
    return pl.pallas_call(
        kernel,
        out_shape=jax.ShapeDtypeStruct((N, D), seq.dtype),
        grid_spec=pltpu.PrefetchScalarGridSpec(
            num_scalar_prefetch=0,
            grid=grid,
            in_specs=[
                # K combination weights as SMEM scalars (cheap scalar reads).
                pl.BlockSpec(memory_space=pltpu.MemorySpace.SMEM),
                tok_spec,
                seq_spec,
            ],
            out_specs=seq_spec,
        ),
        compiler_params=pltpu.CompilerParams(
            dimension_semantics=("parallel",),  # shards the row axis across TCs on v7x
            vmem_limit_bytes=vmem_limit,
        ),
    )(w_flat, texttoken, seq)


if __name__ == "__main__":
    key = jax.random.PRNGKey(0)
    kw, kt, ks = jax.random.split(key, 3)

    # Small shapes: 3 text tokens of dim 128, a 16-row sequence.
    K, D, N = 3, 128, 16

    # texttokens: list of (1, D) prompt tokens, concatenated along dim 0 (as in __init__).
    tok_keys = jax.random.split(kt, K)
    texttokens = [jax.random.normal(k, (1, D), dtype=jnp.float32) for k in tok_keys]
    texttoken = jnp.concatenate(texttokens, axis=0)

    # weighted_prompt.reset_parameters(): uniform(0, 1).
    weight = jax.random.uniform(kw, (1, K), dtype=jnp.float32, minval=0.0, maxval=1.0)
    seq = jax.random.normal(ks, (N, D), dtype=jnp.float32)

    out_mul = jax.block_until_ready(
        composedtoken_forward(weight, texttoken, seq, type_="mul"))
    out_add = jax.block_until_ready(
        composedtoken_forward(weight, texttoken, seq, type_="add"))

    # Plain-JAX reference.
    comb = (weight.reshape(K, 1) * texttoken).sum(axis=0)  # (D,)
    ref_mul = comb * seq
    ref_add = comb + seq
    assert jnp.allclose(out_mul, ref_mul, atol=1e-5, rtol=1e-5), "mul mismatch vs reference"
    assert jnp.allclose(out_add, ref_add, atol=1e-5, rtol=1e-5), "add mismatch vs reference"

    print("KERNEL_OK")
</pallas_src>

<mosaic_0001>
module attributes {stable_mosaic.version = 11 : i64} {
  func.func @_composed_kernel(%arg0: i32, %arg1: memref<3xf32, #tpu.memory_space<smem>>, %arg2: memref<3x128xf32, #tpu.memory_space<vmem>>, %arg3: memref<16x128xf32, #tpu.memory_space<vmem>>, %arg4: memref<16x128xf32, #tpu.memory_space<vmem>>) attributes {dimension_semantics = [#tpu.dimension_semantics<parallel>], iteration_bounds = array<i64: 1>, scalar_prefetch = 0 : i64, scratch_operands = 0 : i64, tpu.core_type = #tpu.core_type<tc>, window_params = [{transform_indices = @transform_0, window_bounds = array<i64: 3>}, {pipeline_mode = #tpu.pipeline_mode<synchronous>, transform_indices = @transform_1, window_bounds = array<i64: 3, 128>}, {transform_indices = @transform_2, window_bounds = array<i64: 16, 128>}, {transform_indices = @transform_3, window_bounds = array<i64: 16, 128>}]} {
    %c0 = arith.constant 0 : index
    %c0_0 = arith.constant 0 : index
    %0 = vector.load %arg2[%c0, %c0_0] : memref<3x128xf32, #tpu.memory_space<vmem>>, vector<3x128xf32>
    %c0_1 = arith.constant 0 : index
    %1 = memref.load %arg1[%c0_1] : memref<3xf32, #tpu.memory_space<smem>>
    %2 = vector.extract_strided_slice %0 {offsets = [0, 0], sizes = [1, 128], strides = [1, 1]} : vector<3x128xf32> to vector<1x128xf32>
    %3 = vector.broadcast %1 : f32 to vector<1x128xf32>
    %4 = arith.mulf %3, %2 : vector<1x128xf32>
    %c1 = arith.constant 1 : index
    %5 = memref.load %arg1[%c1] : memref<3xf32, #tpu.memory_space<smem>>
    %6 = vector.extract_strided_slice %0 {offsets = [1, 0], sizes = [1, 128], strides = [1, 1]} : vector<3x128xf32> to vector<1x128xf32>
    %7 = vector.broadcast %5 : f32 to vector<1x128xf32>
    %8 = arith.mulf %7, %6 : vector<1x128xf32>
    %9 = arith.addf %4, %8 : vector<1x128xf32>
    %c2 = arith.constant 2 : index
    %10 = memref.load %arg1[%c2] : memref<3xf32, #tpu.memory_space<smem>>
    %11 = vector.extract_strided_slice %0 {offsets = [2, 0], sizes = [1, 128], strides = [1, 1]} : vector<3x128xf32> to vector<1x128xf32>
    %12 = vector.broadcast %10 : f32 to vector<1x128xf32>
    %13 = arith.mulf %12, %11 : vector<1x128xf32>
    %14 = arith.addf %9, %13 : vector<1x128xf32>
    %c0_2 = arith.constant 0 : index
    %c0_3 = arith.constant 0 : index
    %15 = vector.load %arg3[%c0_2, %c0_3] : memref<16x128xf32, #tpu.memory_space<vmem>>, vector<16x128xf32>
    %16 = vector.broadcast %14 : vector<1x128xf32> to vector<16x128xf32>
    %17 = arith.mulf %16, %15 : vector<16x128xf32>
    %c0_4 = arith.constant 0 : index
    %c0_5 = arith.constant 0 : index
    %18 = vector.load %arg4[%c0_4, %c0_5] : memref<16x128xf32, #tpu.memory_space<vmem>>, vector<16x128xf32>
    tpu.vector_store %arg4[%c0_4, %c0_5], %17 {strides = array<i32>} : memref<16x128xf32, #tpu.memory_space<vmem>>, vector<16x128xf32>,
    return
  }
  func.func @transform_0(%arg0: i32) -> i32 {
    %c0_i32 = arith.constant 0 : i32
    %c0_i32_0 = arith.constant 0 : i32
    return %c0_i32 : i32
  }
  func.func @transform_1(%arg0: i32) -> (i32, i32) {
    %c0_i32 = arith.constant 0 : i32
    %c0_i32_0 = arith.constant 0 : i32
    %c0_i32_1 = arith.constant 0 : i32
    return %c0_i32, %c0_i32_0 : i32, i32
  }
  func.func @transform_2(%arg0: i32) -> (i32, i32) {
    %c0_i32 = arith.constant 0 : i32
    %c0_i32_0 = arith.constant 0 : i32
    return %arg0, %c0_i32 : i32, i32
  }
  func.func @transform_3(%arg0: i32) -> (i32, i32) {
    %c0_i32 = arith.constant 0 : i32
    %c0_i32_0 = arith.constant 0 : i32
    return %arg0, %c0_i32 : i32, i32
  }
}

</mosaic_0001>

<bundles_post_ra>
// kernel: tpu_custom_call.1
= control target key start
LH: loop header
LB: loop body
LE: loop exit
PB: predicated region body
PF: predicated region fallthrough
CT: control target
= control target key end

     0   :  { %8 = vsyncpa [#allocation5], 0  ;;  %s271_s0 = inlined_call_operand.hbm [shape: f32[3], index: 0, kind: input, shape index: {}]   ;;  %s272_s1 = inlined_call_operand.hbm [shape: f32[3,128], index: 1, kind: input, shape index: {}]   ;;  %s273_s2 = inlined_call_operand.hbm [shape: f32[16,128], index: 2, kind: input, shape index: {}]   ;;  %s274_s3 = inlined_call_operand.hbm [shape: f32[16,128], index: 3, kind: output, shape index: {}]  }
   0x1   :  { %9 = vsyncpa [#allocation3], 0 }
   0x2   :  { %10 = vsyncpa [#allocation8], 0 }
   0x3   :  { %11 = vsyncpa [#allocation4], 0  ;;  %s107_s14 = scalar_lea.hbm %s271_s0, 16 }
   0x4   :  { %p108_p0 = scmp.ne.s32.totalorder %s271_s0, %s107_s14  ;;  %p111_p1 = scmp.lt.u32.totalorder %s107_s14, %s271_s0 }
   0x6   :  { %p113_p2 = pnand %p111_p1, %p108_p0 }
   0x8   :  { %116 = shalt.err (!%p113_p2)
}
   0x9   :  { %s191_s19 = smov [#allocation2]   ;;  %s192_s22 = smov [#allocation6]  }
   0xa   :  { %19 = dma.hbm_to_smem %s271_s0, 16, %s191_s19, [#allocation5]  }
   0xb   :  { %s26_s23 = sshll.u32 %s192_s22, 4  ;;  %s193_s24 = smov [#allocation7]   ;;  %s27_s23 = int_to_ptr.vmem [resolvable:$true] %s26_s23 }
   0xc   :  { %s35_s25 = sshll.u32 %s193_s24, 4  ;;  %s117_s28 = scalar_lea.hbm %s272_s1, 64  ;;  %s36_s25 = int_to_ptr.vmem [resolvable:$true] %s35_s25 }
   0xd   :  { %p118_p3 = scmp.ne.s32.totalorder %s272_s1, %s117_s28  ;;  %p121_p4 = scmp.lt.u32.totalorder %s117_s28, %s272_s1 }
   0xf   :  { %p123_p5 = pnand %p121_p4, %p118_p3 }
  0x11   :  { %126 = shalt.err (!%p123_p5)
}
  0x12   :  { %s127_s0 = scalar_lea.vmem %s27_s23, 64  ;;  %p132_p7 = scmp.lt.s32.totalorder %s27_s23, %s27_s23 }
  0x13   :  { %p128_p6 = scmp.ne.s32.totalorder %s27_s23, %s127_s0  ;;  %p133_p8 = scmp.lt.s32.totalorder %s127_s0, %s127_s0 }
  0x15   :  { %p134_p9 = por %p133_p8, %p132_p7 }
  0x17   :  { %p135_p10 = pnand %p134_p9, %p128_p6 }
  0x19   :  { %138 = shalt.err (!%p135_p10)
}
  0x1a   :  { %29 = dma.hbm_to_vmem [thread:$0]  %s272_s1, 64, %s27_s23, [#allocation3]  }
  0x1b   :  { %s139_s10 = scalar_lea.hbm %s273_s2, 256 }
  0x1c   :  { %p140_p11 = scmp.ne.s32.totalorder %s273_s2, %s139_s10  ;;  %p143_p12 = scmp.lt.u32.totalorder %s139_s10, %s273_s2 }
  0x1e   :  { %p145_p13 = pnand %p143_p12, %p140_p11 }
  0x20   :  { %148 = shalt.err (!%p145_p13)
}
  0x21   :  { %s149_s15 = scalar_lea.vmem %s36_s25, 256  ;;  %p154_p1 = scmp.lt.s32.totalorder %s36_s25, %s36_s25 }
  0x22   :  { %p150_p0 = scmp.ne.s32.totalorder %s36_s25, %s149_s15  ;;  %p155_p2 = scmp.lt.s32.totalorder %s149_s15, %s149_s15 }
  0x24   :  { %p156_p3 = por %p155_p2, %p154_p1 }
  0x26   :  { %p157_p4 = pnand %p156_p3, %p150_p0 }
  0x28   :  { %160 = shalt.err (!%p157_p4)
}
  0x29   :  { %s194_s1 = smov 128   ;;  %s195_s16 = smov 8  }
  0x2a   :  { %41 = dma.hbm_to_vmem [thread:$0]  %s273_s2, 256, %s36_s25, [#allocation8], %s194_s1, %s194_s1, %s195_s16  }
  0x2b   :  { %183 = dma.done.wait [#allocation5], 16  }
  0x2c   :  { %184 = vsyncadd [#allocation5], 4294967280 }
  0x2d   :  { %185 = dma.done.wait [#allocation3], 64  }
  0x2e   :  { %186 = vsyncadd [#allocation3], 4294967232 }
  0x2f   :  { %187 = dma.done.wait [#allocation8], 256  }
  0x30   :  { %188 = vsyncadd [#allocation8], 4294967040 }
  0x31   :  { %51 = sfence }
  0x32   :  { %s53_s19 = sld [smem:[#allocation2]]  ;;  %s99_s20 = sld [smem:[#allocation2 + $0x1]]  ;;  %v72_v0 = vlaneseq  ;;  %v52_v1 = vld [vmem:[#allocation6] sm:$0x7]  ;;  %v70_v14 = vld [vmem:[#allocation7] sm:$0xff]  ;;  %v71_v15 = vld [vmem:[#allocation7 + $0x8] sm:$0xff] }
  0x33   :  { %s100_s21 = sld [smem:[#allocation2 + $0x2]]  ;;  %s196_s2 = smov [#allocation9]  }
  0x34   :  { %v73_v7 = vshrl.u32 %v72_v0, 7  ;;  %s85_s22 = sshll.u32 %s196_s2, 4  ;;  %s86_s22 = int_to_ptr.vmem [resolvable:$true] %s85_s22 }
  0x35   :  { %s161_s23 = scalar_lea.vmem %s86_s22, 256  ;;  %p166_p6 = scmp.lt.s32.totalorder %s86_s22, %s86_s22 }
  0x36   :  { %v74_v12 = vsub.s32 0, %v73_v7  ;;  %p162_p5 = scmp.ne.s32.totalorder %s86_s22, %s161_s23  ;;  %p167_p7 = scmp.lt.s32.totalorder %s161_s23, %s161_s23 }
  0x38   :  { %v54_v2 = vstv %s53_s19  ;;  %v57_v3 = vstv %s99_s20  ;;  %p168_p8 = por %p167_p7, %p166_p6 }
  0x39   :  { %v55_v4 = vmul.f32 %v54_v2, %v52_v1  ;;  %v58_v5 = vmul.f32 %v57_v3, %v52_v1  ;;  %v64_v6 = vstv %s100_s21 }
  0x3a   :  { %v65_v8 = vmul.f32 %v64_v6, %v52_v1  ;;  %p169_p9 = pnand %p168_p8, %p162_p5 }
  0x3b   :  { %v60_v9 = vrot.slane %v58_v5, 1 }
  0x3c   :  { %v67_v10 = vrot.slane %v65_v8, 2 }
  0x3d   :  { %v62_v11 = vadd.f32 %v60_v9, %v55_v4 }
  0x3f   :  { %v69_v13 = vadd.f32 %v67_v10, %v62_v11 }
  0x41   :  { %v75_v16 = vrot.slane %v69_v13, %v74_v12 }
  0x43   :  { %v76_v17 = vmul.f32 %v75_v16, %v70_v14  ;;  %v77_v18 = vmul.f32 %v75_v16, %v71_v15 }
  0x45   :  { %78 = vst [vmem:[#allocation9] sm:$0xff] %v76_v17  ;;  %79 = vst [vmem:[#allocation9 + $0x8] sm:$0xff] %v77_v18 }
  0x46   :  { %172 = shalt.err (!%p169_p9)
}
  0x47   :  { %s173_s26 = scalar_lea.hbm %s274_s3, 256 }
  0x48   :  { %p174_p10 = scmp.ne.s32.totalorder %s274_s3, %s173_s26  ;;  %p177_p11 = scmp.lt.u32.totalorder %s173_s26, %s274_s3 }
  0x4a   :  { %p179_p12 = pnand %p177_p11, %p174_p10 }
  0x4c   :  { %182 = shalt.err (!%p179_p12)
}
  0x4d   :  { %91 = dma.vmem_to_hbm [thread:$0]  %s86_s22, 256, %s274_s3, [#allocation4], %s194_s1, %s194_s1, %s195_s16  }
  0x4e   :  { %189 = dma.done.wait [#allocation4], 256  }
  0x4f   :  { %190 = vsyncadd [#allocation4], 4294967040 }
  0x50   :  { %95 = vsyncpa [#allocation3], 1 }
  0x51   :  { %96 = vsyncpa [#allocation8], 1 }
  0x52   :  { %97 = vsyncpa [#allocation4], 1 }
  0x53   :  { %98 = vsyncpa [#allocation5], 1 }

</bundles_post_ra>
